<compile_context>
chip_gen: v5e
topology: v5e:2x2
jax: 0.10.0
libtpu: 0.0.40
codegen_flags: <defaults>
</compile_context>

<pallas_src>
import jax
import jax.numpy as jnp
from jax.experimental import pallas as pl
from jax.experimental.pallas import tpu as pltpu


def _round_up(x, m):
    return ((x + m - 1) // m) * m


def _tpu_vmem_and_kind():
    """Best-effort device query: (usable VMEM bytes, lowercase device kind)."""
    kind = ""
    try:
        kind = jax.devices()[0].device_kind.lower()
    except Exception:
        pass
    vmem = None
    try:
        vmem = int(pltpu.get_tpu_info().vmem_capacity_bytes)
    except Exception:
        vmem = None
    if not vmem or vmem <= 0:
        # v7x has 64 MiB / TensorCore; v5e / v6e have 128 MiB.
        vmem = (64 << 20) if ("v7" in kind or "tpu7" in kind) else (128 << 20)
    return vmem, kind


def gsa_kernel(s_ref, h_ref,
               w1_ref, b1_ref, w2_ref, b2_ref,
               wg_ref, ws_ref, bgs_ref,
               out_ref):
    S = s_ref[...]
    H = h_ref[...]
    mm = w1_ref.dtype  # f32 by default, bf16 when requested by the wrapper

    # Ds = relu(S @ W1.T + b1), Dh = relu(H @ W2.T + b2)  (weights pre-transposed)
    Ds = jnp.maximum(
        jnp.dot(S.astype(mm), w1_ref[...],
                preferred_element_type=jnp.float32) + b1_ref[...], 0.0)
    Dh = jnp.maximum(
        jnp.dot(H.astype(mm), w2_ref[...],
                preferred_element_type=jnp.float32) + b2_ref[...], 0.0)

    # gate = Ds @ W_G.T + Dh @ W_S.T + (b_G + b_S)  — two K=Dp matmuls, f32 acc.
    gate = (jnp.dot(Ds.astype(mm), wg_ref[...], preferred_element_type=jnp.float32)
            + jnp.dot(Dh.astype(mm), ws_ref[...], preferred_element_type=jnp.float32)
            + bgs_ref[...])
    F = jax.nn.sigmoid(gate)

    # Md = F*S + (1-F)*H  ==  H + F*(S-H)   (f32 epilogue)
    out_ref[...] = (H + F * (S - H)).astype(out_ref.dtype)


def graph_sequence_attention(S, H, params, *, row_tile=None,
                             matmul_dtype=jnp.float32):
    """S, H: (batch, seq, embed_dim) float32.  Returns Md with the same shape."""
    B, L, D = S.shape
    rows = B * L

    Dp = _round_up(D, 128)                       # lane-dense feature padding
    vmem_cap, kind = _tpu_vmem_and_kind()
    is_v7 = ("v7" in kind) or ("tpu7" in kind)
    mm_itemsize = jnp.dtype(matmul_dtype).itemsize

    # --- row_tile heuristic (per generation), clamped to the problem size -----
    if row_tile is None:
        if is_v7:
            row_tile = 512 if Dp <= 512 else 256
        else:
            row_tile = 1024 if Dp <= 512 else 512
    row_tile = max(8, min(_round_up(row_tile, 8), _round_up(rows, 8)))

    # v7x: avoid a 1-long grid so the "parallel" axis can span both TensorCores.
    if is_v7 and rows > 8 and pl.cdiv(rows, row_tile) < 2:
        row_tile = max(8, _round_up(pl.cdiv(rows, 2), 8))

    # --- VMEM accounting (used both to shrink the tile and to set the limit) --
    def vmem_needed(rt, weight_bufs):
        io = 3 * 2 * rt * Dp * 4                      # S/H/out tiles, 2 buffers, f32
        w = weight_bufs * (4 * Dp * Dp * mm_itemsize  # W1,W2,Wg,Ws
                           + 3 * Dp * 4)              # b1,b2,bgs (f32)
        inter = 6 * rt * Dp * 4                       # Ds,Dh,gate,F,(S-H),blend
        if mm_itemsize < 4:
            inter += 4 * rt * Dp * mm_itemsize        # bf16 casts of S,H,Ds,Dh
        return int(1.25 * (io + inter)) + w

    budget = vmem_cap - (4 << 20)
    while row_tile > 8 and vmem_needed(row_tile, 1) > budget:
        row_tile = max(8, _round_up(row_tile // 2, 8))
    if vmem_needed(row_tile, 1) > budget:
        # TODO(synk): tile the feature (embed) dimension for very large embed_dim
        # so all four (Dp, Dp) weight blocks need not be VMEM-resident at once.
        raise ValueError(
            f"embed_dim={D} too large for single-shot weight residency "
            f"(needs {vmem_needed(row_tile, 1)} B, budget {budget} B)")

    rows_p = pl.cdiv(rows, row_tile) * row_tile

    # --- parameter preparation (pre-transposed, padded) -----------------------
    w1, b1, w2, b2, wg, bg, ws, bs = params

    def pad_wT(w):  # transpose + zero-pad an nn.Linear weight (D, D) -> (Dp, Dp)
        return jnp.pad(w.T, ((0, Dp - D), (0, Dp - D))).astype(matmul_dtype)

    def pad_b(b):   # biases stay f32 (added after the f32-accumulated matmul)
        return jnp.pad(b, (0, Dp - D)).reshape(1, Dp).astype(jnp.float32)

    w1t, w2t, wgt, wst = pad_wT(w1), pad_wT(w2), pad_wT(wg), pad_wT(ws)
    b1p, b2p, bgsp = pad_b(b1), pad_b(b2), pad_b(bg + bs)

    S2 = jnp.pad(S.reshape(rows, D), ((0, rows_p - rows), (0, Dp - D)))
    H2 = jnp.pad(H.reshape(rows, D), ((0, rows_p - rows), (0, Dp - D)))

    row_spec = pl.BlockSpec((row_tile, Dp), lambda i: (i, 0))

    def run(single_buffer_weights):
        if single_buffer_weights:
            def const_spec(shape):
                return pl.BlockSpec(shape, lambda i: (0, 0),
                                    pipeline_mode=pl.Buffered(1))
        else:
            def const_spec(shape):
                return pl.BlockSpec(shape, lambda i: (0, 0))

        in_specs = [row_spec, row_spec,
                    const_spec((Dp, Dp)), const_spec((1, Dp)),
                    const_spec((Dp, Dp)), const_spec((1, Dp)),
                    const_spec((Dp, Dp)), const_spec((Dp, Dp)),
                    const_spec((1, Dp))]

        weight_bufs = 1 if single_buffer_weights else 2
        vmem_limit = int(min(max(vmem_needed(row_tile, weight_bufs), 32 << 20),
                             budget))

        return pl.pallas_call(
            gsa_kernel,
            out_shape=jax.ShapeDtypeStruct((rows_p, Dp), S.dtype),
            grid_spec=pltpu.PrefetchScalarGridSpec(
                num_scalar_prefetch=0,
                grid=(rows_p // row_tile,),
                in_specs=in_specs,
                out_specs=row_spec,
            ),
            compiler_params=pltpu.CompilerParams(
                dimension_semantics=("parallel",),
                vmem_limit_bytes=vmem_limit,
            ),
        )(S2, H2, w1t, b1p, w2t, b2p, wgt, wst, bgsp)

    try:
        out = run(single_buffer_weights=True)
    except Exception:
        # Older Pallas versions may reject pl.Buffered(1); use default buffering.
        out = run(single_buffer_weights=False)

    return out[:rows, :D].reshape(B, L, D)


def init_params(key, embed_dim):
    """Deterministic init matching nn.Linear shapes: weight (D, D), bias (D,)."""
    ks = jax.random.split(key, 8)
    scale = 1.0 / jnp.sqrt(embed_dim)

    def lin(kw, kb):
        w = jax.random.uniform(kw, (embed_dim, embed_dim), jnp.float32, -scale, scale)
        b = jax.random.uniform(kb, (embed_dim,), jnp.float32, -scale, scale)
        return w, b

    w1, b1 = lin(ks[0], ks[1])
    w2, b2 = lin(ks[2], ks[3])
    wg, bg = lin(ks[4], ks[5])
    ws, bs = lin(ks[6], ks[7])
    return (w1, b1, w2, b2, wg, bg, ws, bs)


def reference(S, H, params):
    w1, b1, w2, b2, wg, bg, ws, bs = params
    Ds = jax.nn.relu(S @ w1.T + b1)
    Dh = jax.nn.relu(H @ w2.T + b2)
    F = jax.nn.sigmoid(Ds @ wg.T + bg + Dh @ ws.T + bs)
    return F * S + (1.0 - F) * H


if __name__ == "__main__":
    batch, seq, embed_dim = 2, 8, 32
    key = jax.random.PRNGKey(0)
    k_s, k_h, k_p = jax.random.split(key, 3)

    S = jax.random.normal(k_s, (batch, seq, embed_dim), jnp.float32)
    H = jax.random.normal(k_h, (batch, seq, embed_dim), jnp.float32)
    params = init_params(k_p, embed_dim)

    ref = reference(S, H, params)

    # Strict f32 path.
    Md = jax.block_until_ready(graph_sequence_attention(S, H, params))
    assert Md.shape == (batch, seq, embed_dim)
    assert jnp.allclose(Md, ref, atol=1e-5, rtol=1e-5), "f32 mismatch vs reference"

    # bf16 MXU path (v5e/v6e/v7x fast path) with a dtype-appropriate tolerance.
    Md_bf16 = jax.block_until_ready(
        graph_sequence_attention(S, H, params, matmul_dtype=jnp.bfloat16))
    assert jnp.allclose(Md_bf16, ref, atol=5e-2, rtol=5e-2), "bf16 mismatch vs reference"

    print("KERNEL_OK")
</pallas_src>

<mosaic_0001>
module attributes {stable_mosaic.version = 11 : i64} {
  func.func @gsa_kernel(%arg0: i32, %arg1: memref<16x128xf32, #tpu.memory_space<vmem>>, %arg2: memref<16x128xf32, #tpu.memory_space<vmem>>, %arg3: memref<128x128xf32, #tpu.memory_space<vmem>>, %arg4: memref<1x128xf32, #tpu.memory_space<vmem>>, %arg5: memref<128x128xf32, #tpu.memory_space<vmem>>, %arg6: memref<1x128xf32, #tpu.memory_space<vmem>>, %arg7: memref<128x128xf32, #tpu.memory_space<vmem>>, %arg8: memref<128x128xf32, #tpu.memory_space<vmem>>, %arg9: memref<1x128xf32, #tpu.memory_space<vmem>>, %arg10: memref<16x128xf32, #tpu.memory_space<vmem>>) attributes {dimension_semantics = [#tpu.dimension_semantics<parallel>], iteration_bounds = array<i64: 1>, scalar_prefetch = 0 : i64, scratch_operands = 0 : i64, tpu.core_type = #tpu.core_type<tc>, window_params = [{transform_indices = @transform_0, window_bounds = array<i64: 16, 128>}, {transform_indices = @transform_1, window_bounds = array<i64: 16, 128>}, {pipeline_mode = #tpu.pipeline_mode<synchronous>, transform_indices = @transform_2, window_bounds = array<i64: 128, 128>}, {pipeline_mode = #tpu.pipeline_mode<synchronous>, transform_indices = @transform_3, window_bounds = array<i64: 1, 128>}, {pipeline_mode = #tpu.pipeline_mode<synchronous>, transform_indices = @transform_4, window_bounds = array<i64: 128, 128>}, {pipeline_mode = #tpu.pipeline_mode<synchronous>, transform_indices = @transform_5, window_bounds = array<i64: 1, 128>}, {pipeline_mode = #tpu.pipeline_mode<synchronous>, transform_indices = @transform_6, window_bounds = array<i64: 128, 128>}, {pipeline_mode = #tpu.pipeline_mode<synchronous>, transform_indices = @transform_7, window_bounds = array<i64: 128, 128>}, {pipeline_mode = #tpu.pipeline_mode<synchronous>, transform_indices = @transform_8, window_bounds = array<i64: 1, 128>}, {transform_indices = @transform_9, window_bounds = array<i64: 16, 128>}]} {
    %c0 = arith.constant 0 : index
    %c0_0 = arith.constant 0 : index
    %0 = vector.load %arg1[%c0, %c0_0] : memref<16x128xf32, #tpu.memory_space<vmem>>, vector<16x128xf32>
    %c0_1 = arith.constant 0 : index
    %c0_2 = arith.constant 0 : index
    %1 = vector.load %arg2[%c0_1, %c0_2] : memref<16x128xf32, #tpu.memory_space<vmem>>, vector<16x128xf32>
    %c0_3 = arith.constant 0 : index
    %c0_4 = arith.constant 0 : index
    %2 = vector.load %arg3[%c0_3, %c0_4] : memref<128x128xf32, #tpu.memory_space<vmem>>, vector<128x128xf32>
    %cst = arith.constant dense<0.000000e+00> : vector<16x128xf32>
    %3 = tpu.matmul %0, %2, %cst {dimension_numbers = #tpu.dot_dimension_numbers<[1], [0], [0], [1], [0, 0, 1, 1], [], []>} : vector<16x128xf32>, vector<128x128xf32>, vector<16x128xf32> -> vector<16x128xf32>
    %c0_5 = arith.constant 0 : index
    %c0_6 = arith.constant 0 : index
    %4 = vector.load %arg4[%c0_5, %c0_6] : memref<1x128xf32, #tpu.memory_space<vmem>>, vector<1x128xf32>
    %5 = vector.broadcast %4 : vector<1x128xf32> to vector<16x128xf32>
    %6 = arith.addf %3, %5 : vector<16x128xf32>
    %cst_7 = arith.constant 0.000000e+00 : f32
    %7 = vector.broadcast %cst_7 : f32 to vector<16x128xf32>
    %8 = arith.maximumf %6, %7 : vector<16x128xf32>
    %c0_8 = arith.constant 0 : index
    %c0_9 = arith.constant 0 : index
    %9 = vector.load %arg5[%c0_8, %c0_9] : memref<128x128xf32, #tpu.memory_space<vmem>>, vector<128x128xf32>
    %cst_10 = arith.constant dense<0.000000e+00> : vector<16x128xf32>
    %10 = tpu.matmul %1, %9, %cst_10 {dimension_numbers = #tpu.dot_dimension_numbers<[1], [0], [0], [1], [0, 0, 1, 1], [], []>} : vector<16x128xf32>, vector<128x128xf32>, vector<16x128xf32> -> vector<16x128xf32>
    %c0_11 = arith.constant 0 : index
    %c0_12 = arith.constant 0 : index
    %11 = vector.load %arg6[%c0_11, %c0_12] : memref<1x128xf32, #tpu.memory_space<vmem>>, vector<1x128xf32>
    %12 = vector.broadcast %11 : vector<1x128xf32> to vector<16x128xf32>
    %13 = arith.addf %10, %12 : vector<16x128xf32>
    %cst_13 = arith.constant 0.000000e+00 : f32
    %14 = vector.broadcast %cst_13 : f32 to vector<16x128xf32>
    %15 = arith.maximumf %13, %14 : vector<16x128xf32>
    %c0_14 = arith.constant 0 : index
    %c0_15 = arith.constant 0 : index
    %16 = vector.load %arg7[%c0_14, %c0_15] : memref<128x128xf32, #tpu.memory_space<vmem>>, vector<128x128xf32>
    %cst_16 = arith.constant dense<0.000000e+00> : vector<16x128xf32>
    %17 = tpu.matmul %8, %16, %cst_16 {dimension_numbers = #tpu.dot_dimension_numbers<[1], [0], [0], [1], [0, 0, 1, 1], [], []>} : vector<16x128xf32>, vector<128x128xf32>, vector<16x128xf32> -> vector<16x128xf32>
    %c0_17 = arith.constant 0 : index
    %c0_18 = arith.constant 0 : index
    %18 = vector.load %arg8[%c0_17, %c0_18] : memref<128x128xf32, #tpu.memory_space<vmem>>, vector<128x128xf32>
    %cst_19 = arith.constant dense<0.000000e+00> : vector<16x128xf32>
    %19 = tpu.matmul %15, %18, %cst_19 {dimension_numbers = #tpu.dot_dimension_numbers<[1], [0], [0], [1], [0, 0, 1, 1], [], []>} : vector<16x128xf32>, vector<128x128xf32>, vector<16x128xf32> -> vector<16x128xf32>
    %20 = arith.addf %17, %19 : vector<16x128xf32>
    %c0_20 = arith.constant 0 : index
    %c0_21 = arith.constant 0 : index
    %21 = vector.load %arg9[%c0_20, %c0_21] : memref<1x128xf32, #tpu.memory_space<vmem>>, vector<1x128xf32>
    %22 = vector.broadcast %21 : vector<1x128xf32> to vector<16x128xf32>
    %23 = arith.addf %20, %22 : vector<16x128xf32>
    %24 = arith.negf %23 : vector<16x128xf32>
    %25 = math.exp %24 : vector<16x128xf32>
    %cst_22 = arith.constant 1.000000e+00 : f32
    %26 = vector.broadcast %cst_22 : f32 to vector<16x128xf32>
    %27 = arith.addf %26, %25 : vector<16x128xf32>
    %28 = arith.divf %26, %27 : vector<16x128xf32>
    %29 = arith.subf %0, %1 : vector<16x128xf32>
    %30 = arith.mulf %28, %29 : vector<16x128xf32>
    %31 = arith.addf %1, %30 : vector<16x128xf32>
    %c0_23 = arith.constant 0 : index
    %c0_24 = arith.constant 0 : index
    %32 = vector.load %arg10[%c0_23, %c0_24] : memref<16x128xf32, #tpu.memory_space<vmem>>, vector<16x128xf32>
    tpu.vector_store %arg10[%c0_23, %c0_24], %31 {strides = array<i32>} : memref<16x128xf32, #tpu.memory_space<vmem>>, vector<16x128xf32>,
    return
  }
  func.func @transform_0(%arg0: i32) -> (i32, i32) {
    %c0_i32 = arith.constant 0 : i32
    %c0_i32_0 = arith.constant 0 : i32
    return %arg0, %c0_i32 : i32, i32
  }
  func.func @transform_1(%arg0: i32) -> (i32, i32) {
    %c0_i32 = arith.constant 0 : i32
    %c0_i32_0 = arith.constant 0 : i32
    return %arg0, %c0_i32 : i32, i32
  }
  func.func @transform_2(%arg0: i32) -> (i32, i32) {
    %c0_i32 = arith.constant 0 : i32
    %c0_i32_0 = arith.constant 0 : i32
    %c0_i32_1 = arith.constant 0 : i32
    return %c0_i32, %c0_i32_0 : i32, i32
  }
  func.func @transform_3(%arg0: i32) -> (i32, i32) {
    %c0_i32 = arith.constant 0 : i32
    %c0_i32_0 = arith.constant 0 : i32
    %c0_i32_1 = arith.constant 0 : i32
    return %c0_i32, %c0_i32_0 : i32, i32
  }
  func.func @transform_4(%arg0: i32) -> (i32, i32) {
    %c0_i32 = arith.constant 0 : i32
    %c0_i32_0 = arith.constant 0 : i32
    %c0_i32_1 = arith.constant 0 : i32
    return %c0_i32, %c0_i32_0 : i32, i32
  }
  func.func @transform_5(%arg0: i32) -> (i32, i32) {
    %c0_i32 = arith.constant 0 : i32
    %c0_i32_0 = arith.constant 0 : i32
    %c0_i32_1 = arith.constant 0 : i32
    return %c0_i32, %c0_i32_0 : i32, i32
  }
  func.func @transform_6(%arg0: i32) -> (i32, i32) {
    %c0_i32 = arith.constant 0 : i32
    %c0_i32_0 = arith.constant 0 : i32
    %c0_i32_1 = arith.constant 0 : i32
    return %c0_i32, %c0_i32_0 : i32, i32
  }
  func.func @transform_7(%arg0: i32) -> (i32, i32) {
    %c0_i32 = arith.constant 0 : i32
    %c0_i32_0 = arith.constant 0 : i32
    %c0_i32_1 = arith.constant 0 : i32
    return %c0_i32, %c0_i32_0 : i32, i32
  }
  func.func @transform_8(%arg0: i32) -> (i32, i32) {
    %c0_i32 = arith.constant 0 : i32
    %c0_i32_0 = arith.constant 0 : i32
    %c0_i32_1 = arith.constant 0 : i32
    return %c0_i32, %c0_i32_0 : i32, i32
  }
  func.func @transform_9(%arg0: i32) -> (i32, i32) {
    %c0_i32 = arith.constant 0 : i32
    %c0_i32_0 = arith.constant 0 : i32
    return %arg0, %c0_i32 : i32, i32
  }
}

module attributes {stable_mosaic.version = 11 : i64} {
  func.func @gsa_kernel(%arg0: i32, %arg1: memref<16x128xf32, #tpu.memory_space<vmem>>, %arg2: memref<16x128xf32, #tpu.memory_space<vmem>>, %arg3: memref<128x128xf32, #tpu.memory_space<vmem>>, %arg4: memref<1x128xf32, #tpu.memory_space<vmem>>, %arg5: memref<128x128xf32, #tpu.memory_space<vmem>>, %arg6: memref<1x128xf32, #tpu.memory_space<vmem>>, %arg7: memref<128x128xf32, #tpu.memory_space<vmem>>, %arg8: memref<128x128xf32, #tpu.memory_space<vmem>>, %arg9: memref<1x128xf32, #tpu.memory_space<vmem>>, %arg10: memref<16x128xf32, #tpu.memory_space<vmem>>) attributes {dimension_semantics = [#tpu.dimension_semantics<parallel>], iteration_bounds = array<i64: 1>, scalar_prefetch = 0 : i64, scratch_operands = 0 : i64, tpu.core_type = #tpu.core_type<tc>, window_params = [{transform_indices = @transform_0, window_bounds = array<i64: 16, 128>}, {transform_indices = @transform_1, window_bounds = array<i64: 16, 128>}, {pipeline_mode = #tpu.pipeline_mode<synchronous>, transform_indices = @transform_2, window_bounds = array<i64: 128, 128>}, {pipeline_mode = #tpu.pipeline_mode<synchronous>, transform_indices = @transform_3, window_bounds = array<i64: 1, 128>}, {pipeline_mode = #tpu.pipeline_mode<synchronous>, transform_indices = @transform_4, window_bounds = array<i64: 128, 128>}, {pipeline_mode = #tpu.pipeline_mode<synchronous>, transform_indices = @transform_5, window_bounds = array<i64: 1, 128>}, {pipeline_mode = #tpu.pipeline_mode<synchronous>, transform_indices = @transform_6, window_bounds = array<i64: 128, 128>}, {pipeline_mode = #tpu.pipeline_mode<synchronous>, transform_indices = @transform_7, window_bounds = array<i64: 128, 128>}, {pipeline_mode = #tpu.pipeline_mode<synchronous>, transform_indices = @transform_8, window_bounds = array<i64: 1, 128>}, {transform_indices = @transform_9, window_bounds = array<i64: 16, 128>}]} {
    %c0 = arith.constant 0 : index
    %c0_0 = arith.constant 0 : index
    %0 = vector.load %arg1[%c0, %c0_0] : memref<16x128xf32, #tpu.memory_space<vmem>>, vector<16x128xf32>
    %c0_1 = arith.constant 0 : index
    %c0_2 = arith.constant 0 : index
    %1 = vector.load %arg2[%c0_1, %c0_2] : memref<16x128xf32, #tpu.memory_space<vmem>>, vector<16x128xf32>
    %c0_3 = arith.constant 0 : index
    %c0_4 = arith.constant 0 : index
    %2 = vector.load %arg3[%c0_3, %c0_4] : memref<128x128xf32, #tpu.memory_space<vmem>>, vector<128x128xf32>
    %cst = arith.constant dense<0.000000e+00> : vector<16x128xf32>
    %3 = tpu.matmul %0, %2, %cst {dimension_numbers = #tpu.dot_dimension_numbers<[1], [0], [0], [1], [0, 0, 1, 1], [], []>} : vector<16x128xf32>, vector<128x128xf32>, vector<16x128xf32> -> vector<16x128xf32>
    %c0_5 = arith.constant 0 : index
    %c0_6 = arith.constant 0 : index
    %4 = vector.load %arg4[%c0_5, %c0_6] : memref<1x128xf32, #tpu.memory_space<vmem>>, vector<1x128xf32>
    %5 = vector.broadcast %4 : vector<1x128xf32> to vector<16x128xf32>
    %6 = arith.addf %3, %5 : vector<16x128xf32>
    %cst_7 = arith.constant 0.000000e+00 : f32
    %7 = vector.broadcast %cst_7 : f32 to vector<16x128xf32>
    %8 = arith.maximumf %6, %7 : vector<16x128xf32>
    %c0_8 = arith.constant 0 : index
    %c0_9 = arith.constant 0 : index
    %9 = vector.load %arg5[%c0_8, %c0_9] : memref<128x128xf32, #tpu.memory_space<vmem>>, vector<128x128xf32>
    %cst_10 = arith.constant dense<0.000000e+00> : vector<16x128xf32>
    %10 = tpu.matmul %1, %9, %cst_10 {dimension_numbers = #tpu.dot_dimension_numbers<[1], [0], [0], [1], [0, 0, 1, 1], [], []>} : vector<16x128xf32>, vector<128x128xf32>, vector<16x128xf32> -> vector<16x128xf32>
    %c0_11 = arith.constant 0 : index
    %c0_12 = arith.constant 0 : index
    %11 = vector.load %arg6[%c0_11, %c0_12] : memref<1x128xf32, #tpu.memory_space<vmem>>, vector<1x128xf32>
    %12 = vector.broadcast %11 : vector<1x128xf32> to vector<16x128xf32>
    %13 = arith.addf %10, %12 : vector<16x128xf32>
    %cst_13 = arith.constant 0.000000e+00 : f32
    %14 = vector.broadcast %cst_13 : f32 to vector<16x128xf32>
    %15 = arith.maximumf %13, %14 : vector<16x128xf32>
    %c0_14 = arith.constant 0 : index
    %c0_15 = arith.constant 0 : index
    %16 = vector.load %arg7[%c0_14, %c0_15] : memref<128x128xf32, #tpu.memory_space<vmem>>, vector<128x128xf32>
    %cst_16 = arith.constant dense<0.000000e+00> : vector<16x128xf32>
    %17 = tpu.matmul %8, %16, %cst_16 {dimension_numbers = #tpu.dot_dimension_numbers<[1], [0], [0], [1], [0, 0, 1, 1], [], []>} : vector<16x128xf32>, vector<128x128xf32>, vector<16x128xf32> -> vector<16x128xf32>
    %c0_17 = arith.constant 0 : index
    %c0_18 = arith.constant 0 : index
    %18 = vector.load %arg8[%c0_17, %c0_18] : memref<128x128xf32, #tpu.memory_space<vmem>>, vector<128x128xf32>
    %cst_19 = arith.constant dense<0.000000e+00> : vector<16x128xf32>
    %19 = tpu.matmul %15, %18, %cst_19 {dimension_numbers = #tpu.dot_dimension_numbers<[1], [0], [0], [1], [0, 0, 1, 1], [], []>} : vector<16x128xf32>, vector<128x128xf32>, vector<16x128xf32> -> vector<16x128xf32>
    %20 = arith.addf %17, %19 : vector<16x128xf32>
    %c0_20 = arith.constant 0 : index
    %c0_21 = arith.constant 0 : index
    %21 = vector.load %arg9[%c0_20, %c0_21] : memref<1x128xf32, #tpu.memory_space<vmem>>, vector<1x128xf32>
    %22 = vector.broadcast %21 : vector<1x128xf32> to vector<16x128xf32>
    %23 = arith.addf %20, %22 : vector<16x128xf32>
    %24 = arith.negf %23 : vector<16x128xf32>
    %25 = math.exp %24 : vector<16x128xf32>
    %cst_22 = arith.constant 1.000000e+00 : f32
    %26 = vector.broadcast %cst_22 : f32 to vector<16x128xf32>
    %27 = arith.addf %26, %25 : vector<16x128xf32>
    %28 = arith.divf %26, %27 : vector<16x128xf32>
    %29 = arith.subf %0, %1 : vector<16x128xf32>
    %30 = arith.mulf %28, %29 : vector<16x128xf32>
    %31 = arith.addf %1, %30 : vector<16x128xf32>
    %c0_23 = arith.constant 0 : index
    %c0_24 = arith.constant 0 : index
    %32 = vector.load %arg10[%c0_23, %c0_24] : memref<16x128xf32, #tpu.memory_space<vmem>>, vector<16x128xf32>
    tpu.vector_store %arg10[%c0_23, %c0_24], %31 {strides = array<i32>} : memref<16x128xf32, #tpu.memory_space<vmem>>, vector<16x128xf32>,
    return
  }
  func.func @transform_0(%arg0: i32) -> (i32, i32) {
    %c0_i32 = arith.constant 0 : i32
    %c0_i32_0 = arith.constant 0 : i32
    return %arg0, %c0_i32 : i32, i32
  }
  func.func @transform_1(%arg0: i32) -> (i32, i32) {
    %c0_i32 = arith.constant 0 : i32
    %c0_i32_0 = arith.constant 0 : i32
    return %arg0, %c0_i32 : i32, i32
  }
  func.func @transform_2(%arg0: i32) -> (i32, i32) {
    %c0_i32 = arith.constant 0 : i32
    %c0_i32_0 = arith.constant 0 : i32
    %c0_i32_1 = arith.constant 0 : i32
    return %c0_i32, %c0_i32_0 : i32, i32
  }
  func.func @transform_3(%arg0: i32) -> (i32, i32) {
    %c0_i32 = arith.constant 0 : i32
    %c0_i32_0 = arith.constant 0 : i32
    %c0_i32_1 = arith.constant 0 : i32
    return %c0_i32, %c0_i32_0 : i32, i32
  }
  func.func @transform_4(%arg0: i32) -> (i32, i32) {
    %c0_i32 = arith.constant 0 : i32
    %c0_i32_0 = arith.constant 0 : i32
    %c0_i32_1 = arith.constant 0 : i32
    return %c0_i32, %c0_i32_0 : i32, i32
  }
  func.func @transform_5(%arg0: i32) -> (i32, i32) {
    %c0_i32 = arith.constant 0 : i32
    %c0_i32_0 = arith.constant 0 : i32
    %c0_i32_1 = arith.constant 0 : i32
    return %c0_i32, %c0_i32_0 : i32, i32
  }
  func.func @transform_6(%arg0: i32) -> (i32, i32) {
    %c0_i32 = arith.constant 0 : i32
    %c0_i32_0 = arith.constant 0 : i32
    %c0_i32_1 = arith.constant 0 : i32
    return %c0_i32, %c0_i32_0 : i32, i32
  }
  func.func @transform_7(%arg0: i32) -> (i32, i32) {
    %c0_i32 = arith.constant 0 : i32
    %c0_i32_0 = arith.constant 0 : i32
    %c0_i32_1 = arith.constant 0 : i32
    return %c0_i32, %c0_i32_0 : i32, i32
  }
  func.func @transform_8(%arg0: i32) -> (i32, i32) {
    %c0_i32 = arith.constant 0 : i32
    %c0_i32_0 = arith.constant 0 : i32
    %c0_i32_1 = arith.constant 0 : i32
    return %c0_i32, %c0_i32_0 : i32, i32
  }
  func.func @transform_9(%arg0: i32) -> (i32, i32) {
    %c0_i32 = arith.constant 0 : i32
    %c0_i32_0 = arith.constant 0 : i32
    return %arg0, %c0_i32 : i32, i32
  }
}

</mosaic_0001>

<bundles_post_ra>
// kernel: tpu_custom_call.1
= control target key start
LH: loop header
LB: loop body
LE: loop exit
PB: predicated region body
PF: predicated region fallthrough
CT: control target
= control target key end

     0   :  { %14 = vsyncpa [#allocation3], 0  ;;  %s701_s0 = inlined_call_operand.hbm [shape: f32[16,128], index: 0, kind: input, shape index: {}]   ;;  %s702_s1 = inlined_call_operand.hbm [shape: f32[16,128], index: 1, kind: input, shape index: {}]   ;;  %s703_s2 = inlined_call_operand.hbm [shape: f32[128,128], index: 2, kind: input, shape index: {}]   ;;  %s704_s3 = inlined_call_operand.vmem [shape: f32[1,128], index: 3, kind: input, shape index: {}]   ;;  %s705_s4 = inlined_call_operand.hbm [shape: f32[128,128], index: 4, kind: input, shape index: {}]   ;;  %s706_s5 = inlined_call_operand.vmem [shape: f32[1,128], index: 5, kind: input, shape index: {}]   ;;  %s707_s6 = inlined_call_operand.hbm [shape: f32[128,128], index: 6, kind: input, shape index: {}]   ;;  %s708_s7 = inlined_call_operand.hbm [shape: f32[128,128], index: 7, kind: input, shape index: {}]   ;;  %s709_s8 = inlined_call_operand.vmem [shape: f32[1,128], index: 8, kind: input, shape index: {}]   ;;  %s710_s9 = inlined_call_operand.hbm [shape: f32[16,128], index: 9, kind: output, shape index: {}]  }
   0x1   :  { %15 = vsyncpa [#allocation6], 0 }
   0x2   :  { %16 = vsyncpa [#allocation9], 0 }
   0x3   :  { %17 = vsyncpa [#allocation12], 0 }
   0x4   :  { %18 = vsyncpa [#allocation4], 0  ;;  %s36_s11 = sshll.u32 %s702_s1, 4  ;;  %s573_s12 = smov [#allocation5]   ;;  %s37_s11 = int_to_ptr.hbm [resolvable:$true] %s36_s11 }
   0x5   :  { %s38_s13 = sshll.u32 %s573_s12, 4  ;;  %s64_s16 = sshll.u32 %s705_s4, 4  ;;  %s39_s13 = int_to_ptr.vmem [resolvable:$true] %s38_s13  ;;  %s65_s16 = int_to_ptr.hbm [resolvable:$true] %s64_s16 }
   0x6   :  { %s574_s17 = smov 128   ;;  %s575_s18 = smov 8  }
   0x7   :  { %44 = dma.hbm_to_vmem [thread:$0]  %s37_s11, 256, %s39_s13, [#allocation6], %s574_s17, %s574_s17, %s575_s18  }
   0x8   :  { %s576_s19 = smov [#allocation8]   ;;  %s23_s1 = sshll.u32 %s701_s0, 4  ;;  %s24_s1 = int_to_ptr.hbm [resolvable:$true] %s23_s1 }
   0x9   :  { %s66_s20 = sshll.u32 %s576_s19, 4  ;;  %s49_s24 = sshll.u32 %s703_s2, 4  ;;  %s67_s20 = int_to_ptr.vmem [resolvable:$true] %s66_s20  ;;  %s50_s24 = int_to_ptr.hbm [resolvable:$true] %s49_s24 }
   0xa   :  { %72 = dma.hbm_to_vmem [thread:$0]  %s65_s16, 2048, %s67_s20, [#allocation9], %s574_s17, %s574_s17, %s575_s18  }
   0xb   :  { %s577_s25 = smov [#allocation2]   ;;  %s578_s27 = smov [#allocation7]  }
   0xc   :  { %s25_s26 = sshll.u32 %s577_s25, 4  ;;  %s51_s0 = sshll.u32 %s578_s27, 4  ;;  %s26_s26 = int_to_ptr.vmem [resolvable:$true] %s25_s26  ;;  %s52_s0 = int_to_ptr.vmem [resolvable:$true] %s51_s0 }
   0xd   :  { %31 = dma.hbm_to_vmem [thread:$0]  %s24_s1, 256, %s26_s26, [#allocation3], %s574_s17, %s574_s17, %s575_s18  }
   0xe   :  { %s79_s30 = sshll.u32 %s707_s6, 4  ;;  %s92_s11 = sshll.u32 %s708_s7, 4  ;;  %s80_s30 = int_to_ptr.hbm [resolvable:$true] %s79_s30  ;;  %s93_s11 = int_to_ptr.hbm [resolvable:$true] %s92_s11 }
   0xf   :  { %57 = dma.hbm_to_vmem [thread:$0]  %s50_s24, 2048, %s52_s0, [#allocation6], %s574_s17, %s574_s17, %s575_s18  }
  0x10   :  { %s579_s12 = smov [#allocation10]   ;;  %s580_s14 = smov [#allocation11]  }
  0x11   :  { %s81_s13 = sshll.u32 %s579_s12, 4  ;;  %s94_s6 = sshll.u32 %s580_s14, 4  ;;  %s82_s13 = int_to_ptr.vmem [resolvable:$true] %s81_s13  ;;  %s95_s6 = int_to_ptr.vmem [resolvable:$true] %s94_s6 }
  0x12   :  { %87 = dma.hbm_to_vmem [thread:$0]  %s80_s30, 2048, %s82_s13, [#allocation9], %s574_s17, %s574_s17, %s575_s18  }
  0x13   :  { %100 = dma.hbm_to_vmem [thread:$0]  %s93_s11, 2048, %s95_s6, [#allocation12], %s574_s17, %s574_s17, %s575_s18  }
  0x14   :  { %563 = dma.done.wait [#allocation3], 256  }
  0x15   :  { %564 = vsyncadd [#allocation3], 4294967040 }
  0x16   :  { %565 = dma.done.wait [#allocation6], 2304  }
  0x17   :  { %566 = vsyncadd [#allocation6], 4294964992 }
  0x18   :  { %567 = dma.done.wait [#allocation9], 4096  }
  0x19   :  { %568 = vsyncadd [#allocation9], 4294963200 }
  0x1a   :  { %569 = dma.done.wait [#allocation12], 2048  }
  0x1b   :  { %570 = vsyncadd [#allocation12], 4294965248  ;;  %v146_v0 = vld [vmem:[#allocation7 + $0x78] sm:$0xff]  ;;  %v145_v2 = vld [vmem:[#allocation7 + $0x70] sm:$0xff]  ;;  %s357_s1 = sshll.u32 %s710_s9, 4  ;;  %s358_s1 = int_to_ptr.hbm [resolvable:$true] %s357_s1 }
  0x1c   :  { %v191_v1 = vld [vmem:[#allocation8 + $0x78] sm:$0xff]  ;;  %151 = vmatpush.msra.mxu0 %v146_v0  ;;  %v190_v3 = vld [vmem:[#allocation8 + $0x70] sm:$0xff]  ;;  %v144_v4 = vld [vmem:[#allocation7 + $0x68] sm:$0xff] }
  0x1d   :  { %196 = vmatpush.msra.mxu1 %v191_v1  ;;  %v189_v5 = vld [vmem:[#allocation8 + $0x68] sm:$0xff]  ;;  %v143_v6 = vld [vmem:[#allocation7 + $0x60] sm:$0xff]  ;;  %v142_v8 = vld [vmem:[#allocation7 + $0x58] sm:$0xff] }
  0x1e   :  { %152 = vmatpush.msra.mxu0 %v145_v2  ;;  %v188_v7 = vld [vmem:[#allocation8 + $0x60] sm:$0xff]  ;;  %v187_v9 = vld [vmem:[#allocation8 + $0x58] sm:$0xff]  ;;  %v141_v10 = vld [vmem:[#allocation7 + $0x50] sm:$0xff] }
  0x1f   :  { %197 = vmatpush.msra.mxu1 %v190_v3  ;;  %v186_v11 = vld [vmem:[#allocation8 + $0x50] sm:$0xff]  ;;  %v140_v12 = vld [vmem:[#allocation7 + $0x48] sm:$0xff]  ;;  %v139_v14 = vld [vmem:[#allocation7 + $0x40] sm:$0xff] }
  0x20   :  { %153 = vmatpush.msra.mxu0 %v144_v4  ;;  %v185_v13 = vld [vmem:[#allocation8 + $0x48] sm:$0xff]  ;;  %v184_v15 = vld [vmem:[#allocation8 + $0x40] sm:$0xff]  ;;  %v252_v16 = vld [vmem:[#allocation11 + $0x78] sm:$0xff] }
  0x21   :  { %198 = vmatpush.msra.mxu1 %v189_v5  ;;  %v236_v17 = vld [vmem:[#allocation10 + $0x78] sm:$0xff]  ;;  %v251_v18 = vld [vmem:[#allocation11 + $0x70] sm:$0xff]  ;;  %253 = vmatpush.msra.mxu2 %v252_v16  ;;  %v250_v22 = vld [vmem:[#allocation11 + $0x68] sm:$0xff] }
  0x22   :  { %154 = vmatpush.msra.mxu0 %v143_v6  ;;  %v235_v19 = vld [vmem:[#allocation10 + $0x70] sm:$0xff]  ;;  %v138_v20 = vld [vmem:[#allocation7 + $0x38] sm:$0xff]  ;;  %276 = vmatpush.msra.mxu3 %v236_v17  ;;  %v234_v23 = vld [vmem:[#allocation10 + $0x68] sm:$0xff] }
  0x23   :  { %199 = vmatpush.msra.mxu1 %v188_v7  ;;  %v183_v21 = vld [vmem:[#allocation8 + $0x38] sm:$0xff]  ;;  %v137_v24 = vld [vmem:[#allocation7 + $0x30] sm:$0xff]  ;;  %254 = vmatpush.msra.mxu2 %v251_v18  ;;  %v249_v26 = vld [vmem:[#allocation11 + $0x60] sm:$0xff] }
  0x24   :  { %155 = vmatpush.msra.mxu0 %v142_v8  ;;  %v182_v25 = vld [vmem:[#allocation8 + $0x30] sm:$0xff]  ;;  %277 = vmatpush.msra.mxu3 %v235_v19  ;;  %v233_v27 = vld [vmem:[#allocation10 + $0x60] sm:$0xff]  ;;  %v136_v28 = vld [vmem:[#allocation7 + $0x28] sm:$0xff] }
  0x25   :  { %200 = vmatpush.msra.mxu1 %v187_v9  ;;  %v181_v29 = vld [vmem:[#allocation8 + $0x28] sm:$0xff]  ;;  %255 = vmatpush.msra.mxu2 %v250_v22  ;;  %v135_v30 = vld [vmem:[#allocation7 + $0x20] sm:$0xff]  ;;  %v248_v31 = vld [vmem:[#allocation11 + $0x58] sm:$0xff] }
  0x26   :  { %156 = vmatpush.msra.mxu0 %v141_v10  ;;  %278 = vmatpush.msra.mxu3 %v234_v23  ;;  %v232_v32 = vld [vmem:[#allocation10 + $0x58] sm:$0xff]  ;;  %v180_v33 = vld [vmem:[#allocation8 + $0x20] sm:$0xff]  ;;  %v247_v34 = vld [vmem:[#allocation11 + $0x50] sm:$0xff] }
  0x27   :  { %201 = vmatpush.msra.mxu1 %v186_v11  ;;  %256 = vmatpush.msra.mxu2 %v249_v26  ;;  %v231_v35 = vld [vmem:[#allocation10 + $0x50] sm:$0xff]  ;;  %v134_v36 = vld [vmem:[#allocation7 + $0x18] sm:$0xff]  ;;  %v246_v38 = vld [vmem:[#allocation11 + $0x48] sm:$0xff] }
  0x28   :  { %157 = vmatpush.msra.mxu0 %v140_v12  ;;  %279 = vmatpush.msra.mxu3 %v233_v27  ;;  %v179_v37 = vld [vmem:[#allocation8 + $0x18] sm:$0xff]  ;;  %v230_v39 = vld [vmem:[#allocation10 + $0x48] sm:$0xff]  ;;  %v133_v40 = vld [vmem:[#allocation7 + $0x10] sm:$0xff] }
  0x29   :  { %202 = vmatpush.msra.mxu1 %v185_v13  ;;  %257 = vmatpush.msra.mxu2 %v248_v31  ;;  %v178_v41 = vld [vmem:[#allocation8 + $0x10] sm:$0xff]  ;;  %v245_v42 = vld [vmem:[#allocation11 + $0x40] sm:$0xff]  ;;  %v132_v44 = vld [vmem:[#allocation7 + $0x8] sm:$0xff] }
  0x2a   :  { %158 = vmatpush.msra.mxu0 %v139_v14  ;;  %280 = vmatpush.msra.mxu3 %v232_v32  ;;  %v229_v43 = vld [vmem:[#allocation10 + $0x40] sm:$0xff]  ;;  %v177_v45 = vld [vmem:[#allocation8 + $0x8] sm:$0xff]  ;;  %v244_v46 = vld [vmem:[#allocation11 + $0x38] sm:$0xff] }
  0x2b   :  { %203 = vmatpush.msra.mxu1 %v184_v15  ;;  %258 = vmatpush.msra.mxu2 %v247_v34  ;;  %v228_v47 = vld [vmem:[#allocation10 + $0x38] sm:$0xff]  ;;  %v131_v48 = vld [vmem:[#allocation7] sm:$0xff]  ;;  %v670_v51 = vld [vmem:[#allocation5] sm:$0xff] }
  0x2c   :  { %159 = vmatpush.msra.mxu0 %v138_v20  ;;  %281 = vmatpush.msra.mxu3 %v231_v35  ;;  %v176_v49 = vld [vmem:[#allocation8] sm:$0xff]  ;;  %v243_v52 = vld [vmem:[#allocation11 + $0x30] sm:$0xff]  ;;  %v242_v54 = vld [vmem:[#allocation11 + $0x28] sm:$0xff] }
  0x2d   :  { %204 = vmatpush.msra.mxu1 %v183_v21  ;;  %259 = vmatpush.msra.mxu2 %v246_v38  ;;  %v668_v50 = vld [vmem:[#allocation2] sm:$0xff]  ;;  %v227_v53 = vld [vmem:[#allocation10 + $0x30] sm:$0xff]  ;;  %v226_v55 = vld [vmem:[#allocation10 + $0x28] sm:$0xff] }
  0x2e   :  { %160 = vmatpush.msra.mxu0 %v137_v24  ;;  %282 = vmatpush.msra.mxu3 %v230_v39  ;;  %v241_v56 = vld [vmem:[#allocation11 + $0x20] sm:$0xff]  ;;  %v240_v58 = vld [vmem:[#allocation11 + $0x18] sm:$0xff]  ;;  %v674_v60 = vld [vmem:[#allocation2 + $0x8] sm:$0xff]  ;;  %v343_v39 = vsub.f32 %v668_v50, %v670_v51 }
  0x2f   :  { %205 = vmatpush.msra.mxu1 %v182_v25  ;;  %260 = vmatpush.msra.mxu2 %v245_v42  ;;  %v225_v57 = vld [vmem:[#allocation10 + $0x20] sm:$0xff]  ;;  %v224_v59 = vld [vmem:[#allocation10 + $0x18] sm:$0xff]  ;;  %v239_v62 = vld [vmem:[#allocation11 + $0x10] sm:$0xff] }
  0x30   :  { %161 = vmatpush.msra.mxu0 %v136_v28  ;;  %283 = vmatpush.msra.mxu3 %v229_v43  ;;  %v676_v61 = vld [vmem:[#allocation5 + $0x8] sm:$0xff]  ;;  %v223_v63 = vld [vmem:[#allocation10 + $0x10] sm:$0xff]  ;;  %v238_v0 = vld [vmem:[#allocation11 + $0x8] sm:$0xff] }
  0x31   :  { %206 = vmatpush.msra.mxu1 %v181_v29  ;;  %261 = vmatpush.msra.mxu2 %v244_v46  ;;  %v222_v1 = vld [vmem:[#allocation10 + $0x8] sm:$0xff]  ;;  %v237_v2 = vld [vmem:[#allocation11] sm:$0xff] }
  0x32   :  { %162 = vmatpush.msra.mxu0 %v135_v30  ;;  %284 = vmatpush.msra.mxu3 %v228_v47  ;;  %v221_v3 = vld [vmem:[#allocation10] sm:$0xff] }
  0x33   :  { %207 = vmatpush.msra.mxu1 %v180_v33  ;;  %262 = vmatpush.msra.mxu2 %v243_v52  ;;  %v384_v4 = vld [vmem:[%s704_s3] ss:$0 sm:$0xff] }
  0x34   :  { %163 = vmatpush.msra.mxu0 %v134_v36  ;;  %285 = vmatpush.msra.mxu3 %v227_v53  ;;  %v385_v5 = vld [vmem:[%s706_s5] ss:$0 sm:$0xff]  ;;  %s581_s5 = smov [#allocation13]  }
  0x35   :  { %208 = vmatpush.msra.mxu1 %v179_v37  ;;  %263 = vmatpush.msra.mxu2 %v242_v54  ;;  %v386_v18 = vld [vmem:[%s709_s8] ss:$0 sm:$0xff]  ;;  %s355_s8 = sshll.u32 %s581_s5, 4  ;;  %s356_s8 = int_to_ptr.vmem [resolvable:$true] %s355_s8 }
  0x36   :  { %164 = vmatpush.msra.mxu0 %v133_v40  ;;  %286 = vmatpush.msra.mxu3 %v226_v55 }
  0x37   :  { %209 = vmatpush.msra.mxu1 %v178_v41  ;;  %264 = vmatpush.msra.mxu2 %v241_v56 }
  0x38   :  { %165 = vmatpush.msra.mxu0 %v132_v44  ;;  %287 = vmatpush.msra.mxu3 %v225_v57 }
  0x39   :  { %210 = vmatpush.msra.mxu1 %v177_v45  ;;  %265 = vmatpush.msra.mxu2 %v240_v58 }
  0x3a   :  { %166 = vmatpush.msra.mxu0 %v131_v48  ;;  %288 = vmatpush.msra.mxu3 %v224_v59 }
  0x3b   :  { %211 = vmatpush.msra.mxu1 %v176_v49  ;;  %167 = vmatmul.f32.vlgmr.msra.gmra.mxu0 %v668_v50  ;;  %v344_v50 = vsub.f32 %v674_v60, %v676_v61 }
  0x3c   :  { %212 = vmatmul.f32.vlgmr.msra.gmra.mxu1 %v670_v51  ;;  %266 = vmatpush.msra.mxu2 %v239_v62 }
  0x3d   :  { %289 = vmatpush.msra.mxu3 %v223_v63 }
  0x3e   :  { %267 = vmatpush.msra.mxu2 %v238_v0 }
  0x3f   :  { %290 = vmatpush.msra.mxu3 %v222_v1 }
  0x40   :  { %268 = vmatpush.msra.mxu2 %v237_v2 }
  0x41   :  { %291 = vmatpush.msra.mxu3 %v221_v3 }
  0x43   :  { %170 = vmatmul.f32.gmra.mxu0 %v674_v60 }
  0x44   :  { %215 = vmatmul.f32.gmra.mxu1 %v676_v61 }
  0xb8   :  { %v168_v6 = vpop.f32.mrf.mxu0 }
  0xb9   :  { %v213_v7 = vpop.f32.mrf.mxu1  ;;  %v169_v8 = vadd.f32 %v384_v4, %v168_v6 }
  0xba   :  { %v214_v9 = vadd.f32 %v385_v5, %v213_v7 }
  0xbb   :  { %v174_v10 = vmax.f32 %v169_v8, 0.0 }
  0xbc   :  { %v219_v11 = vmax.f32 %v214_v9, 0.0 }
  0xbd   :  { %292 = vmatmul.f32.vlgmr.msra.gmra.mxu3 %v174_v10 }
  0xbe   :  { %269 = vmatmul.f32.vlgmr.msra.gmra.mxu2 %v219_v11 }
  0xc0   :  { %v171_v12 = vpop.f32.mrf.mxu0 }
  0xc1   :  { %v216_v13 = vpop.f32.mrf.mxu1  ;;  %v172_v14 = vadd.f32 %v384_v4, %v171_v12 }
  0xc2   :  { %v217_v15 = vadd.f32 %v385_v5, %v216_v13 }
  0xc3   :  { %v175_v16 = vmax.f32 %v172_v14, 0.0 }
  0xc4   :  { %v220_v17 = vmax.f32 %v217_v15, 0.0 }
  0xc5   :  { %295 = vmatmul.f32.gmra.mxu3 %v175_v16 }
  0xc6   :  { %272 = vmatmul.f32.gmra.mxu2 %v220_v17 }
 0x140   :  { %v293_v20 = vpop.f32.mrf.mxu3 }
 0x141   :  { %v270_v19 = vpop.f32.mrf.mxu2 }
 0x142   :  { %v294_v21 = vadd.f32 %v293_v20, %v270_v19 }
 0x144   :  { %v303_v22 = vadd.f32 %v386_v18, %v294_v21 }
 0x146   :  { %v373_v23 = vmul.f32 -1.442695, %v303_v22 }
 0x148   :  { %387 = vpow2.f32 %v373_v23  ;;  %v296_v25 = vpop.f32.mrf.mxu3 }
 0x149   :  { %v273_v24 = vpop.f32.mrf.mxu2 }
 0x14a   :  { %v297_v26 = vadd.f32 %v296_v25, %v273_v24 }
 0x14c   :  { %v304_v27 = vadd.f32 %v386_v18, %v297_v26 }
 0x14e   :  { %v388_v28 = vpop.eup %387  ;;  %v374_v29 = vmul.f32 -1.442695, %v304_v27 }
 0x14f   :  { %v311_v30 = vadd.f32 1.0, %v388_v28 }
 0x150   :  { %389 = vpow2.f32 %v374_v29 }
 0x151   :  { %391 = vrcp.f32 %v311_v30  ;;  %v324_v36 = vand.u32 2147483648, %v311_v30  ;;  %v322_v38 = vand.u32 2147483647, %v311_v30  ;;  %vm318_vm1 = vweird.f32 %v311_v30 }
 0x153   :  { %v325_v42 = vor.u32 1.1754944e-38, %v324_v36  ;;  %vm323_vm3 = vcmp.eq.f32.partialorder %v322_v38, 8.507059e+37 }
 0x156   :  { %v390_v31 = vpop.eup %389 }
 0x157   :  { %v392_v32 = vpop.eup %391  ;;  %v312_v33 = vadd.f32 1.0, %v390_v31 }
 0x158   :  { %v314_v34 = vmul.f32 %v392_v32, %v311_v30  ;;  %vm319_vm0 = vweird.f32 %v392_v32 }
 0x159   :  { %393 = vrcp.f32 %v312_v33  ;;  %vm320_vm2 = vmor %vm318_vm1, %vm319_vm0  ;;  %v339_v48 = vand.u32 2147483648, %v312_v33  ;;  %v337_v52 = vand.u32 2147483647, %v312_v33  ;;  %vm333_vm5 = vweird.f32 %v312_v33 }
 0x15a   :  { %v315_v35 = vsub.f32 1.0, %v314_v34 }
 0x15b   :  { %v340_v55 = vor.u32 1.1754944e-38, %v339_v48  ;;  %vm338_vm7 = vcmp.eq.f32.partialorder %v337_v52, 8.507059e+37 }
 0x15c   :  { %v316_v37 = vmul.f32 %v392_v32, %v315_v35 }
 0x15e   :  { %v317_v40 = vadd.f32 %v392_v32, %v316_v37 }
 0x15f   :  { %v394_v41 = vpop.eup %393 }
 0x160   :  { %v329_v43 = vmul.f32 %v394_v41, %v312_v33  ;;  %v321_v44 = vsel %vm320_vm2, %v392_v32, %v317_v40  ;;  %vm334_vm4 = vweird.f32 %v394_v41 }
 0x161   :  { %v326_v45 = vsel %vm323_vm3, %v325_v42, %v321_v44  ;;  %vm335_vm6 = vmor %vm333_vm5, %vm334_vm4 }
 0x162   :  { %v330_v46 = vsub.f32 1.0, %v329_v43  ;;  %v345_v47 = vmul.f32 %v343_v39, %v326_v45 }
 0x164   :  { %v331_v49 = vmul.f32 %v394_v41, %v330_v46  ;;  %v347_v53 = vadd.f32 %v345_v47, %v670_v51 }
 0x166   :  { %v332_v54 = vadd.f32 %v394_v41, %v331_v49  ;;  %349 = vst [vmem:[#allocation13] sm:$0xff] %v347_v53 }
 0x168   :  { %v336_v56 = vsel %vm335_vm6, %v394_v41, %v332_v54 }
 0x169   :  { %v341_v57 = vsel %vm338_vm7, %v340_v55, %v336_v56 }
 0x16a   :  { %v346_v58 = vmul.f32 %v344_v50, %v341_v57 }
 0x16c   :  { %v348_v51 = vadd.f32 %v346_v58, %v676_v61 }
 0x16e   :  { %350 = vst [vmem:[#allocation13 + $0x8] sm:$0xff] %v348_v51 }
 0x16f   :  { %363 = dma.vmem_to_hbm [thread:$0]  %s356_s8, 256, %s358_s1, [#allocation4], %s574_s17, %s574_s17, %s575_s18  }
 0x170   :  { %571 = dma.done.wait [#allocation4], 256  }
 0x171   :  { %572 = vsyncadd [#allocation4], 4294967040 }
 0x172   :  { %368 = vsyncpa [#allocation3], 1 }
 0x173   :  { %369 = vsyncpa [#allocation6], 1 }
 0x174   :  { %370 = vsyncpa [#allocation9], 1 }
 0x175   :  { %371 = vsyncpa [#allocation12], 1 }
 0x176   :  { %372 = vsyncpa [#allocation4], 1 }

// kernel: tpu_custom_call.1
= control target key start
LH: loop header
LB: loop body
LE: loop exit
PB: predicated region body
PF: predicated region fallthrough
CT: control target
= control target key end

     0   :  { %14 = vsyncpa [#allocation3], 0  ;;  %s701_s0 = inlined_call_operand.hbm [shape: f32[16,128], index: 0, kind: input, shape index: {}]   ;;  %s702_s1 = inlined_call_operand.hbm [shape: f32[16,128], index: 1, kind: input, shape index: {}]   ;;  %s703_s2 = inlined_call_operand.hbm [shape: f32[128,128], index: 2, kind: input, shape index: {}]   ;;  %s704_s3 = inlined_call_operand.vmem [shape: f32[1,128], index: 3, kind: input, shape index: {}]   ;;  %s705_s4 = inlined_call_operand.hbm [shape: f32[128,128], index: 4, kind: input, shape index: {}]   ;;  %s706_s5 = inlined_call_operand.vmem [shape: f32[1,128], index: 5, kind: input, shape index: {}]   ;;  %s707_s6 = inlined_call_operand.hbm [shape: f32[128,128], index: 6, kind: input, shape index: {}]   ;;  %s708_s7 = inlined_call_operand.hbm [shape: f32[128,128], index: 7, kind: input, shape index: {}]   ;;  %s709_s8 = inlined_call_operand.vmem [shape: f32[1,128], index: 8, kind: input, shape index: {}]   ;;  %s710_s9 = inlined_call_operand.hbm [shape: f32[16,128], index: 9, kind: output, shape index: {}]  }
   0x1   :  { %15 = vsyncpa [#allocation6], 0 }
   0x2   :  { %16 = vsyncpa [#allocation9], 0 }
   0x3   :  { %17 = vsyncpa [#allocation12], 0 }
   0x4   :  { %18 = vsyncpa [#allocation4], 0  ;;  %s36_s11 = sshll.u32 %s702_s1, 4  ;;  %s573_s12 = smov [#allocation5]   ;;  %s37_s11 = int_to_ptr.hbm [resolvable:$true] %s36_s11 }
   0x5   :  { %s38_s13 = sshll.u32 %s573_s12, 4  ;;  %s64_s16 = sshll.u32 %s705_s4, 4  ;;  %s39_s13 = int_to_ptr.vmem [resolvable:$true] %s38_s13  ;;  %s65_s16 = int_to_ptr.hbm [resolvable:$true] %s64_s16 }
   0x6   :  { %s574_s17 = smov 128   ;;  %s575_s18 = smov 8  }
   0x7   :  { %44 = dma.hbm_to_vmem [thread:$0]  %s37_s11, 256, %s39_s13, [#allocation6], %s574_s17, %s574_s17, %s575_s18  }
   0x8   :  { %s576_s19 = smov [#allocation8]   ;;  %s23_s1 = sshll.u32 %s701_s0, 4  ;;  %s24_s1 = int_to_ptr.hbm [resolvable:$true] %s23_s1 }
   0x9   :  { %s66_s20 = sshll.u32 %s576_s19, 4  ;;  %s49_s24 = sshll.u32 %s703_s2, 4  ;;  %s67_s20 = int_to_ptr.vmem [resolvable:$true] %s66_s20  ;;  %s50_s24 = int_to_ptr.hbm [resolvable:$true] %s49_s24 }
   0xa   :  { %72 = dma.hbm_to_vmem [thread:$0]  %s65_s16, 2048, %s67_s20, [#allocation9], %s574_s17, %s574_s17, %s575_s18  }
   0xb   :  { %s577_s25 = smov [#allocation2]   ;;  %s578_s27 = smov [#allocation7]  }
   0xc   :  { %s25_s26 = sshll.u32 %s577_s25, 4  ;;  %s51_s0 = sshll.u32 %s578_s27, 4  ;;  %s26_s26 = int_to_ptr.vmem [resolvable:$true] %s25_s26  ;;  %s52_s0 = int_to_ptr.vmem [resolvable:$true] %s51_s0 }
   0xd   :  { %31 = dma.hbm_to_vmem [thread:$0]  %s24_s1, 256, %s26_s26, [#allocation3], %s574_s17, %s574_s17, %s575_s18  }
   0xe   :  { %s79_s30 = sshll.u32 %s707_s6, 4  ;;  %s92_s11 = sshll.u32 %s708_s7, 4  ;;  %s80_s30 = int_to_ptr.hbm [resolvable:$true] %s79_s30  ;;  %s93_s11 = int_to_ptr.hbm [resolvable:$true] %s92_s11 }
   0xf   :  { %57 = dma.hbm_to_vmem [thread:$0]  %s50_s24, 2048, %s52_s0, [#allocation6], %s574_s17, %s574_s17, %s575_s18  }
  0x10   :  { %s579_s12 = smov [#allocation10]   ;;  %s580_s14 = smov [#allocation11]  }
  0x11   :  { %s81_s13 = sshll.u32 %s579_s12, 4  ;;  %s94_s6 = sshll.u32 %s580_s14, 4  ;;  %s82_s13 = int_to_ptr.vmem [resolvable:$true] %s81_s13  ;;  %s95_s6 = int_to_ptr.vmem [resolvable:$true] %s94_s6 }
  0x12   :  { %87 = dma.hbm_to_vmem [thread:$0]  %s80_s30, 2048, %s82_s13, [#allocation9], %s574_s17, %s574_s17, %s575_s18  }
  0x13   :  { %100 = dma.hbm_to_vmem [thread:$0]  %s93_s11, 2048, %s95_s6, [#allocation12], %s574_s17, %s574_s17, %s575_s18  }
  0x14   :  { %563 = dma.done.wait [#allocation3], 256  }
  0x15   :  { %564 = vsyncadd [#allocation3], 4294967040 }
  0x16   :  { %565 = dma.done.wait [#allocation6], 2304  }
  0x17   :  { %566 = vsyncadd [#allocation6], 4294964992 }
  0x18   :  { %567 = dma.done.wait [#allocation9], 4096  }
  0x19   :  { %568 = vsyncadd [#allocation9], 4294963200 }
  0x1a   :  { %569 = dma.done.wait [#allocation12], 2048  }
  0x1b   :  { %570 = vsyncadd [#allocation12], 4294965248  ;;  %v146_v0 = vld [vmem:[#allocation7 + $0x78] sm:$0xff]  ;;  %v145_v2 = vld [vmem:[#allocation7 + $0x70] sm:$0xff]  ;;  %s357_s1 = sshll.u32 %s710_s9, 4  ;;  %s358_s1 = int_to_ptr.hbm [resolvable:$true] %s357_s1 }
  0x1c   :  { %v191_v1 = vld [vmem:[#allocation8 + $0x78] sm:$0xff]  ;;  %151 = vmatpush.msra.mxu0 %v146_v0  ;;  %v190_v3 = vld [vmem:[#allocation8 + $0x70] sm:$0xff]  ;;  %v144_v4 = vld [vmem:[#allocation7 + $0x68] sm:$0xff] }
  0x1d   :  { %196 = vmatpush.msra.mxu1 %v191_v1  ;;  %v189_v5 = vld [vmem:[#allocation8 + $0x68] sm:$0xff]  ;;  %v143_v6 = vld [vmem:[#allocation7 + $0x60] sm:$0xff]  ;;  %v142_v8 = vld [vmem:[#allocation7 + $0x58] sm:$0xff] }
  0x1e   :  { %152 = vmatpush.msra.mxu0 %v145_v2  ;;  %v188_v7 = vld [vmem:[#allocation8 + $0x60] sm:$0xff]  ;;  %v187_v9 = vld [vmem:[#allocation8 + $0x58] sm:$0xff]  ;;  %v141_v10 = vld [vmem:[#allocation7 + $0x50] sm:$0xff] }
  0x1f   :  { %197 = vmatpush.msra.mxu1 %v190_v3  ;;  %v186_v11 = vld [vmem:[#allocation8 + $0x50] sm:$0xff]  ;;  %v140_v12 = vld [vmem:[#allocation7 + $0x48] sm:$0xff]  ;;  %v139_v14 = vld [vmem:[#allocation7 + $0x40] sm:$0xff] }
  0x20   :  { %153 = vmatpush.msra.mxu0 %v144_v4  ;;  %v185_v13 = vld [vmem:[#allocation8 + $0x48] sm:$0xff]  ;;  %v184_v15 = vld [vmem:[#allocation8 + $0x40] sm:$0xff]  ;;  %v252_v16 = vld [vmem:[#allocation11 + $0x78] sm:$0xff] }
  0x21   :  { %198 = vmatpush.msra.mxu1 %v189_v5  ;;  %v236_v17 = vld [vmem:[#allocation10 + $0x78] sm:$0xff]  ;;  %v251_v18 = vld [vmem:[#allocation11 + $0x70] sm:$0xff]  ;;  %253 = vmatpush.msra.mxu2 %v252_v16  ;;  %v250_v22 = vld [vmem:[#allocation11 + $0x68] sm:$0xff] }
  0x22   :  { %154 = vmatpush.msra.mxu0 %v143_v6  ;;  %v235_v19 = vld [vmem:[#allocation10 + $0x70] sm:$0xff]  ;;  %v138_v20 = vld [vmem:[#allocation7 + $0x38] sm:$0xff]  ;;  %276 = vmatpush.msra.mxu3 %v236_v17  ;;  %v234_v23 = vld [vmem:[#allocation10 + $0x68] sm:$0xff] }
  0x23   :  { %199 = vmatpush.msra.mxu1 %v188_v7  ;;  %v183_v21 = vld [vmem:[#allocation8 + $0x38] sm:$0xff]  ;;  %v137_v24 = vld [vmem:[#allocation7 + $0x30] sm:$0xff]  ;;  %254 = vmatpush.msra.mxu2 %v251_v18  ;;  %v249_v26 = vld [vmem:[#allocation11 + $0x60] sm:$0xff] }
  0x24   :  { %155 = vmatpush.msra.mxu0 %v142_v8  ;;  %v182_v25 = vld [vmem:[#allocation8 + $0x30] sm:$0xff]  ;;  %277 = vmatpush.msra.mxu3 %v235_v19  ;;  %v233_v27 = vld [vmem:[#allocation10 + $0x60] sm:$0xff]  ;;  %v136_v28 = vld [vmem:[#allocation7 + $0x28] sm:$0xff] }
  0x25   :  { %200 = vmatpush.msra.mxu1 %v187_v9  ;;  %v181_v29 = vld [vmem:[#allocation8 + $0x28] sm:$0xff]  ;;  %255 = vmatpush.msra.mxu2 %v250_v22  ;;  %v135_v30 = vld [vmem:[#allocation7 + $0x20] sm:$0xff]  ;;  %v248_v31 = vld [vmem:[#allocation11 + $0x58] sm:$0xff] }
  0x26   :  { %156 = vmatpush.msra.mxu0 %v141_v10  ;;  %278 = vmatpush.msra.mxu3 %v234_v23  ;;  %v232_v32 = vld [vmem:[#allocation10 + $0x58] sm:$0xff]  ;;  %v180_v33 = vld [vmem:[#allocation8 + $0x20] sm:$0xff]  ;;  %v247_v34 = vld [vmem:[#allocation11 + $0x50] sm:$0xff] }
  0x27   :  { %201 = vmatpush.msra.mxu1 %v186_v11  ;;  %256 = vmatpush.msra.mxu2 %v249_v26  ;;  %v231_v35 = vld [vmem:[#allocation10 + $0x50] sm:$0xff]  ;;  %v134_v36 = vld [vmem:[#allocation7 + $0x18] sm:$0xff]  ;;  %v246_v38 = vld [vmem:[#allocation11 + $0x48] sm:$0xff] }
  0x28   :  { %157 = vmatpush.msra.mxu0 %v140_v12  ;;  %279 = vmatpush.msra.mxu3 %v233_v27  ;;  %v179_v37 = vld [vmem:[#allocation8 + $0x18] sm:$0xff]  ;;  %v230_v39 = vld [vmem:[#allocation10 + $0x48] sm:$0xff]  ;;  %v133_v40 = vld [vmem:[#allocation7 + $0x10] sm:$0xff] }
  0x29   :  { %202 = vmatpush.msra.mxu1 %v185_v13  ;;  %257 = vmatpush.msra.mxu2 %v248_v31  ;;  %v178_v41 = vld [vmem:[#allocation8 + $0x10] sm:$0xff]  ;;  %v245_v42 = vld [vmem:[#allocation11 + $0x40] sm:$0xff]  ;;  %v132_v44 = vld [vmem:[#allocation7 + $0x8] sm:$0xff] }
  0x2a   :  { %158 = vmatpush.msra.mxu0 %v139_v14  ;;  %280 = vmatpush.msra.mxu3 %v232_v32  ;;  %v229_v43 = vld [vmem:[#allocation10 + $0x40] sm:$0xff]  ;;  %v177_v45 = vld [vmem:[#allocation8 + $0x8] sm:$0xff]  ;;  %v244_v46 = vld [vmem:[#allocation11 + $0x38] sm:$0xff] }
  0x2b   :  { %203 = vmatpush.msra.mxu1 %v184_v15  ;;  %258 = vmatpush.msra.mxu2 %v247_v34  ;;  %v228_v47 = vld [vmem:[#allocation10 + $0x38] sm:$0xff]  ;;  %v131_v48 = vld [vmem:[#allocation7] sm:$0xff]  ;;  %v670_v51 = vld [vmem:[#allocation5] sm:$0xff] }
  0x2c   :  { %159 = vmatpush.msra.mxu0 %v138_v20  ;;  %281 = vmatpush.msra.mxu3 %v231_v35  ;;  %v176_v49 = vld [vmem:[#allocation8] sm:$0xff]  ;;  %v243_v52 = vld [vmem:[#allocation11 + $0x30] sm:$0xff]  ;;  %v242_v54 = vld [vmem:[#allocation11 + $0x28] sm:$0xff] }
  0x2d   :  { %204 = vmatpush.msra.mxu1 %v183_v21  ;;  %259 = vmatpush.msra.mxu2 %v246_v38  ;;  %v668_v50 = vld [vmem:[#allocation2] sm:$0xff]  ;;  %v227_v53 = vld [vmem:[#allocation10 + $0x30] sm:$0xff]  ;;  %v226_v55 = vld [vmem:[#allocation10 + $0x28] sm:$0xff] }
  0x2e   :  { %160 = vmatpush.msra.mxu0 %v137_v24  ;;  %282 = vmatpush.msra.mxu3 %v230_v39  ;;  %v241_v56 = vld [vmem:[#allocation11 + $0x20] sm:$0xff]  ;;  %v240_v58 = vld [vmem:[#allocation11 + $0x18] sm:$0xff]  ;;  %v674_v60 = vld [vmem:[#allocation2 + $0x8] sm:$0xff]  ;;  %v343_v39 = vsub.f32 %v668_v50, %v670_v51 }
  0x2f   :  { %205 = vmatpush.msra.mxu1 %v182_v25  ;;  %260 = vmatpush.msra.mxu2 %v245_v42  ;;  %v225_v57 = vld [vmem:[#allocation10 + $0x20] sm:$0xff]  ;;  %v224_v59 = vld [vmem:[#allocation10 + $0x18] sm:$0xff]  ;;  %v239_v62 = vld [vmem:[#allocation11 + $0x10] sm:$0xff] }
  0x30   :  { %161 = vmatpush.msra.mxu0 %v136_v28  ;;  %283 = vmatpush.msra.mxu3 %v229_v43  ;;  %v676_v61 = vld [vmem:[#allocation5 + $0x8] sm:$0xff]  ;;  %v223_v63 = vld [vmem:[#allocation10 + $0x10] sm:$0xff]  ;;  %v238_v0 = vld [vmem:[#allocation11 + $0x8] sm:$0xff] }
  0x31   :  { %206 = vmatpush.msra.mxu1 %v181_v29  ;;  %261 = vmatpush.msra.mxu2 %v244_v46  ;;  %v222_v1 = vld [vmem:[#allocation10 + $0x8] sm:$0xff]  ;;  %v237_v2 = vld [vmem:[#allocation11] sm:$0xff] }
  0x32   :  { %162 = vmatpush.msra.mxu0 %v135_v30  ;;  %284 = vmatpush.msra.mxu3 %v228_v47  ;;  %v221_v3 = vld [vmem:[#allocation10] sm:$0xff] }
  0x33   :  { %207 = vmatpush.msra.mxu1 %v180_v33  ;;  %262 = vmatpush.msra.mxu2 %v243_v52  ;;  %v384_v4 = vld [vmem:[%s704_s3] ss:$0 sm:$0xff] }
  0x34   :  { %163 = vmatpush.msra.mxu0 %v134_v36  ;;  %285 = vmatpush.msra.mxu3 %v227_v53  ;;  %v385_v5 = vld [vmem:[%s706_s5] ss:$0 sm:$0xff]  ;;  %s581_s5 = smov [#allocation13]  }
  0x35   :  { %208 = vmatpush.msra.mxu1 %v179_v37  ;;  %263 = vmatpush.msra.mxu2 %v242_v54  ;;  %v386_v18 = vld [vmem:[%s709_s8] ss:$0 sm:$0xff]  ;;  %s355_s8 = sshll.u32 %s581_s5, 4  ;;  %s356_s8 = int_to_ptr.vmem [resolvable:$true] %s355_s8 }
  0x36   :  { %164 = vmatpush.msra.mxu0 %v133_v40  ;;  %286 = vmatpush.msra.mxu3 %v226_v55 }
  0x37   :  { %209 = vmatpush.msra.mxu1 %v178_v41  ;;  %264 = vmatpush.msra.mxu2 %v241_v56 }
  0x38   :  { %165 = vmatpush.msra.mxu0 %v132_v44  ;;  %287 = vmatpush.msra.mxu3 %v225_v57 }
  0x39   :  { %210 = vmatpush.msra.mxu1 %v177_v45  ;;  %265 = vmatpush.msra.mxu2 %v240_v58 }
  0x3a   :  { %166 = vmatpush.msra.mxu0 %v131_v48  ;;  %288 = vmatpush.msra.mxu3 %v224_v59 }
  0x3b   :  { %211 = vmatpush.msra.mxu1 %v176_v49  ;;  %167 = vmatmul.f32.vlgmr.msra.gmra.mxu0 %v668_v50  ;;  %v344_v50 = vsub.f32 %v674_v60, %v676_v61 }
  0x3c   :  { %212 = vmatmul.f32.vlgmr.msra.gmra.mxu1 %v670_v51  ;;  %266 = vmatpush.msra.mxu2 %v239_v62 }
  0x3d   :  { %289 = vmatpush.msra.mxu3 %v223_v63 }
  0x3e   :  { %267 = vmatpush.msra.mxu2 %v238_v0 }
  0x3f   :  { %290 = vmatpush.msra.mxu3 %v222_v1 }
  0x40   :  { %268 = vmatpush.msra.mxu2 %v237_v2 }
  0x41   :  { %291 = vmatpush.msra.mxu3 %v221_v3 }
  0x43   :  { %170 = vmatmul.f32.gmra.mxu0 %v674_v60 }
  0x44   :  { %215 = vmatmul.f32.gmra.mxu1 %v676_v61 }
  0xb8   :  { %v168_v6 = vpop.f32.mrf.mxu0 }
  0xb9   :  { %v213_v7 = vpop.f32.mrf.mxu1  ;;  %v169_v8 = vadd.f32 %v384_v4, %v168_v6 }
  0xba   :  { %v214_v9 = vadd.f32 %v385_v5, %v213_v7 }
  0xbb   :  { %v174_v10 = vmax.f32 %v169_v8, 0.0 }
  0xbc   :  { %v219_v11 = vmax.f32 %v214_v9, 0.0 }
  0xbd   :  { %292 = vmatmul.f32.vlgmr.msra.gmra.mxu3 %v174_v10 }
  0xbe   :  { %269 = vmatmul.f32.vlgmr.msra.gmra.mxu2 %v219_v11 }
  0xc0   :  { %v171_v12 = vpop.f32.mrf.mxu0 }
  0xc1   :  { %v216_v13 = vpop.f32.mrf.mxu1  ;;  %v172_v14 = vadd.f32 %v384_v4, %v171_v12 }
  0xc2   :  { %v217_v15 = vadd.f32 %v385_v5, %v216_v13 }
  0xc3   :  { %v175_v16 = vmax.f32 %v172_v14, 0.0 }
  0xc4   :  { %v220_v17 = vmax.f32 %v217_v15, 0.0 }
  0xc5   :  { %295 = vmatmul.f32.gmra.mxu3 %v175_v16 }
  0xc6   :  { %272 = vmatmul.f32.gmra.mxu2 %v220_v17 }
 0x140   :  { %v293_v20 = vpop.f32.mrf.mxu3 }
 0x141   :  { %v270_v19 = vpop.f32.mrf.mxu2 }
 0x142   :  { %v294_v21 = vadd.f32 %v293_v20, %v270_v19 }
 0x144   :  { %v303_v22 = vadd.f32 %v386_v18, %v294_v21 }
 0x146   :  { %v373_v23 = vmul.f32 -1.442695, %v303_v22 }
 0x148   :  { %387 = vpow2.f32 %v373_v23  ;;  %v296_v25 = vpop.f32.mrf.mxu3 }
 0x149   :  { %v273_v24 = vpop.f32.mrf.mxu2 }
 0x14a   :  { %v297_v26 = vadd.f32 %v296_v25, %v273_v24 }
 0x14c   :  { %v304_v27 = vadd.f32 %v386_v18, %v297_v26 }
 0x14e   :  { %v388_v28 = vpop.eup %387  ;;  %v374_v29 = vmul.f32 -1.442695, %v304_v27 }
 0x14f   :  { %v311_v30 = vadd.f32 1.0, %v388_v28 }
 0x150   :  { %389 = vpow2.f32 %v374_v29 }
 0x151   :  { %391 = vrcp.f32 %v311_v30  ;;  %v324_v36 = vand.u32 2147483648, %v311_v30  ;;  %v322_v38 = vand.u32 2147483647, %v311_v30  ;;  %vm318_vm1 = vweird.f32 %v311_v30 }
 0x153   :  { %v325_v42 = vor.u32 1.1754944e-38, %v324_v36  ;;  %vm323_vm3 = vcmp.eq.f32.partialorder %v322_v38, 8.507059e+37 }
 0x156   :  { %v390_v31 = vpop.eup %389 }
 0x157   :  { %v392_v32 = vpop.eup %391  ;;  %v312_v33 = vadd.f32 1.0, %v390_v31 }
 0x158   :  { %v314_v34 = vmul.f32 %v392_v32, %v311_v30  ;;  %vm319_vm0 = vweird.f32 %v392_v32 }
 0x159   :  { %393 = vrcp.f32 %v312_v33  ;;  %vm320_vm2 = vmor %vm318_vm1, %vm319_vm0  ;;  %v339_v48 = vand.u32 2147483648, %v312_v33  ;;  %v337_v52 = vand.u32 2147483647, %v312_v33  ;;  %vm333_vm5 = vweird.f32 %v312_v33 }
 0x15a   :  { %v315_v35 = vsub.f32 1.0, %v314_v34 }
 0x15b   :  { %v340_v55 = vor.u32 1.1754944e-38, %v339_v48  ;;  %vm338_vm7 = vcmp.eq.f32.partialorder %v337_v52, 8.507059e+37 }
 0x15c   :  { %v316_v37 = vmul.f32 %v392_v32, %v315_v35 }
 0x15e   :  { %v317_v40 = vadd.f32 %v392_v32, %v316_v37 }
 0x15f   :  { %v394_v41 = vpop.eup %393 }
 0x160   :  { %v329_v43 = vmul.f32 %v394_v41, %v312_v33  ;;  %v321_v44 = vsel %vm320_vm2, %v392_v32, %v317_v40  ;;  %vm334_vm4 = vweird.f32 %v394_v41 }
 0x161   :  { %v326_v45 = vsel %vm323_vm3, %v325_v42, %v321_v44  ;;  %vm335_vm6 = vmor %vm333_vm5, %vm334_vm4 }
 0x162   :  { %v330_v46 = vsub.f32 1.0, %v329_v43  ;;  %v345_v47 = vmul.f32 %v343_v39, %v326_v45 }
 0x164   :  { %v331_v49 = vmul.f32 %v394_v41, %v330_v46  ;;  %v347_v53 = vadd.f32 %v345_v47, %v670_v51 }
 0x166   :  { %v332_v54 = vadd.f32 %v394_v41, %v331_v49  ;;  %349 = vst [vmem:[#allocation13] sm:$0xff] %v347_v53 }
 0x168   :  { %v336_v56 = vsel %vm335_vm6, %v394_v41, %v332_v54 }
 0x169   :  { %v341_v57 = vsel %vm338_vm7, %v340_v55, %v336_v56 }
 0x16a   :  { %v346_v58 = vmul.f32 %v344_v50, %v341_v57 }
 0x16c   :  { %v348_v51 = vadd.f32 %v346_v58, %v676_v61 }
 0x16e   :  { %350 = vst [vmem:[#allocation13 + $0x8] sm:$0xff] %v348_v51 }
 0x16f   :  { %363 = dma.vmem_to_hbm [thread:$0]  %s356_s8, 256, %s358_s1, [#allocation4], %s574_s17, %s574_s17, %s575_s18  }
 0x170   :  { %571 = dma.done.wait [#allocation4], 256  }
 0x171   :  { %572 = vsyncadd [#allocation4], 4294967040 }
 0x172   :  { %368 = vsyncpa [#allocation3], 1 }
 0x173   :  { %369 = vsyncpa [#allocation6], 1 }
 0x174   :  { %370 = vsyncpa [#allocation9], 1 }
 0x175   :  { %371 = vsyncpa [#allocation12], 1 }
 0x176   :  { %372 = vsyncpa [#allocation4], 1 }

</bundles_post_ra>
